<compile_context>
chip_gen: v7x
topology: tpu7x:2x2x1
jax: 0.10.0
libtpu: 0.0.40
codegen_flags: <defaults>
</compile_context>

<pallas_src>
import jax
import jax.numpy as jnp
from jax import lax
from jax.experimental import pallas as pl
from jax.experimental.pallas import tpu as pltpu

# ----- model / problem config (small synthetic shapes) -----
B = 4           # independent graph-batches
N = 16          # nodes per graph-batch
H = 32          # hidden_channels
F = 9           # atom feature fields
L = 3           # num_layers (conv1 + 2 extra convs)
G = 2           # graphs per graph-batch (for global_mean_pool)
EPS = 1e-5      # torch BatchNorm1d default eps
VOCAB = 512 * F # atom_encoder vocabulary (512 * 9 = 4608)


def make_gcn_kernel(bn, bg):
    """bn = BBLK*N nodes per grid step, bg = BBLK*G graphs per grid step."""

    def gcn_kernel(x0_ref, a_ref, pool_ref, w_ref, b_ref, out_ref):
        x = x0_ref[0]                          # (bn, H)  bf16 node embeddings
        a = a_ref[0]                           # (bn, bn) bf16 block-diag normalized adjacency

        # L x GCNConv (+ eval BN folded into W', b') + ReLU.  Dropout = identity.
        for l in range(L):                     # static unroll over layers
            agg = jnp.dot(a, x, preferred_element_type=jnp.float32)         # aggregate
            h = jnp.dot(agg.astype(jnp.bfloat16), w_ref[l],
                        preferred_element_type=jnp.float32)                 # transform
            h = h + b_ref[l:l + 1, :]
            x = jnp.maximum(h, 0.0).astype(jnp.bfloat16)

        # global_mean_pool (block-diag), then lin1 with bn_final folded in + ReLU.
        g = jnp.dot(pool_ref[0], x, preferred_element_type=jnp.float32)     # (bg, H)
        g = jnp.dot(g.astype(jnp.bfloat16), w_ref[L],
                    preferred_element_type=jnp.float32) + b_ref[L:L + 1, :]
        g = jnp.maximum(g, 0.0)

        # lin2 (H -> 1) as VPU multiply + lane reduction (no MXU drain for (bg,1)).
        l2w_row = b_ref[L + 1:L + 2, :]        # (1, H) f32
        l2b = b_ref[L + 2:L + 3, 0:1]          # (1, 1) f32
        out_ref[0] = jnp.sum(g * l2w_row, axis=-1, keepdims=True) + l2b     # (bg, 1)

    return gcn_kernel


def gcn_graph_regression(node_feat, a_norm, pool, emb_table, wstack, bstack,
                         num_steps=None):
    """Fused forward pass over all graph-batches."""
    nb = node_feat.shape[0]

    # Grid shape per chip generation: 2 balanced "parallel" steps on dual-TC
    # v7x, otherwise a single fat step (v5e/v6e have one TensorCore).
    if num_steps is None:
        try:
            kind = jax.devices()[0].device_kind.lower()
        except Exception:
            kind = ""
        num_steps = 2 if "v7" in kind else 1
    if nb % num_steps != 0:
        num_steps = 1
    bblk = nb // num_steps
    bn, bg = bblk * N, bblk * G

    # ---- XLA-side prep (tiny): embedding gather + block-diagonal packing ----
    # convert_to_single_emb + atom_encoder(x).sum(dim=1) as a gather (the
    # in-kernel one-hot matmul was the perf hotspot; the saved HBM round-trip
    # of x0 (~73 KiB) is negligible).
    offs = 1 + jnp.arange(0, F * 512, 512, dtype=jnp.int32)
    idx = node_feat + offs[None, None, :]                        # (B, N, F)
    x0 = jnp.take(emb_table, idx, axis=0).sum(axis=2)            # (B, N, H) f32
    x0 = x0.reshape(num_steps, bn, H)

    a_r = a_norm.reshape(num_steps, bblk, N, N)
    p_r = pool.reshape(num_steps, bblk, G, N)
    a_blk = jnp.zeros((num_steps, bn, bn), jnp.float32)
    p_blk = jnp.zeros((num_steps, bg, bn), jnp.float32)
    for j in range(bblk):
        a_blk = a_blk.at[:, j * N:(j + 1) * N, j * N:(j + 1) * N].set(a_r[:, j])
        p_blk = p_blk.at[:, j * G:(j + 1) * G, j * N:(j + 1) * N].set(p_r[:, j])

    # MXU-native bf16 operands; accumulation stays f32 inside the kernel.
    x0 = x0.astype(jnp.bfloat16)
    a_blk = a_blk.astype(jnp.bfloat16)
    p_blk = p_blk.astype(jnp.bfloat16)
    w_bf16 = wstack.astype(jnp.bfloat16)

    out = pl.pallas_call(
        make_gcn_kernel(bn, bg),
        out_shape=jax.ShapeDtypeStruct((num_steps, bg, 1), jnp.float32),
        grid=(num_steps,),
        in_specs=[
            pl.BlockSpec((1, bn, H), lambda b: (b, 0, 0)),       # per-step embeddings
            pl.BlockSpec((1, bn, bn), lambda b: (b, 0, 0)),      # block-diag adjacency
            pl.BlockSpec((1, bg, bn), lambda b: (b, 0, 0)),      # block-diag pooling
            pl.BlockSpec((L + 1, H, H), lambda b: (0, 0, 0)),    # shared, resident
            pl.BlockSpec((L + 3, H), lambda b: (0, 0)),          # shared, resident
        ],
        out_specs=pl.BlockSpec((1, bg, 1), lambda b: (b, 0, 0)),
        compiler_params=pltpu.CompilerParams(
            dimension_semantics=("parallel",)),
    )(x0, a_blk, p_blk, w_bf16, bstack)

    return out.reshape(nb, G, 1)


def fold_params(params):
    """Fold eval-mode BatchNorm into matmul weights/biases; pack into 2 arrays.
    Only valid in eval mode (running stats)."""
    (wc, bc, bng, bnb, bnm, bnv, bfg, bfb, bfm, bfv, l1w, l1b, l2w, l2b) = params
    sc = bng * lax.rsqrt(bnv + EPS)                    # (L, H) per-layer BN scale
    wc_f = wc * sc[:, None, :]                         # scale output columns
    bc_f = (bc - bnm) * sc + bnb                       # (L, H)
    sf = bfg * lax.rsqrt(bfv + EPS)                    # (H,) bn_final scale
    l1w_f = sf[:, None] * l1w                          # scale input rows
    l1b_f = (bfb - bfm * sf) @ l1w + l1b               # (H,)
    wstack = jnp.concatenate([wc_f, l1w_f[None]], axis=0)                # (L+1, H, H)
    bstack = jnp.concatenate(
        [bc_f, l1b_f[None, :], l2w.reshape(1, H),
         jnp.full((1, H), l2b, jnp.float32)], axis=0)                     # (L+3, H)
    return wstack, bstack


def reference(node_feat, emb_table, a_norm, pool, params):
    """Pure-JAX f32 reference with the original (un-folded) eval-mode semantics."""
    (wc, bc, bng, bnb, bnm, bnv, bfg, bfb, bfm, bfv, l1w, l1b, l2w, l2b) = params
    offs = 1 + jnp.arange(0, F * 512, 512, dtype=jnp.int32)
    outs = []
    for b in range(node_feat.shape[0]):
        idx = node_feat[b] + offs[None, :]                       # convert_to_single_emb
        x = emb_table[idx].sum(axis=1).astype(jnp.float32)       # atom_encoder(.).sum(1)
        for l in range(L):
            h = a_norm[b] @ x @ wc[l] + bc[l][None, :]
            h = (h - bnm[l]) / jnp.sqrt(bnv[l] + EPS) * bng[l] + bnb[l]
            x = jnp.maximum(h, 0.0)
        g = pool[b] @ x
        g = (g - bfm) / jnp.sqrt(bfv + EPS) * bfg + bfb
        g = jnp.maximum(g @ l1w + l1b[None, :], 0.0)
        outs.append(g @ l2w + l2b)
    return jnp.stack(outs, axis=0)                               # (B, G, 1)


if __name__ == "__main__":
    key = jax.random.PRNGKey(0)
    k_feat, k_graph, k_par = jax.random.split(key, 3)

    # ---- synthetic batched graph data ----
    node_feat = jax.random.randint(k_feat, (B, N, F), 0, 64, dtype=jnp.int32)

    a_list, p_list = [], []
    gkeys = jax.random.split(k_graph, B)
    for b in range(B):
        ks = jax.random.split(gkeys[b], 2)
        E = 24
        src = jax.random.randint(ks[0], (E,), 0, N)
        dst = jax.random.randint(ks[1], (E,), 0, N)
        A = jnp.zeros((N, N), jnp.float32).at[dst, src].set(1.0)
        A = jnp.maximum(A, A.T) * (1.0 - jnp.eye(N, dtype=jnp.float32))
        A_hat = A + jnp.eye(N, dtype=jnp.float32)        # GCNConv add_self_loops=True
        dinv = 1.0 / jnp.sqrt(A_hat.sum(axis=1))
        a_list.append((A_hat * dinv[:, None]) * dinv[None, :])   # D^-1/2 (A+I) D^-1/2
        batch_idx = jnp.concatenate([jnp.zeros(N // 2, jnp.int32),
                                     jnp.ones(N - N // 2, jnp.int32)])
        one_hot = (batch_idx[None, :] == jnp.arange(G)[:, None]).astype(jnp.float32)
        p_list.append(one_hot / jnp.maximum(one_hot.sum(axis=1, keepdims=True), 1.0))
    a_norm = jnp.stack(a_list)       # (B, N, N)
    pool = jnp.stack(p_list)         # (B, G, N)  global_mean_pool matrices

    # ---- deterministic parameter init (matches module shapes) ----
    ks = jax.random.split(k_par, 14)
    emb_table = 0.02 * jax.random.normal(ks[0], (VOCAB, H), jnp.float32)
    emb_table = emb_table.at[0].set(0.0)                 # padding_idx=0

    wc = (1.0 / jnp.sqrt(H)) * jax.random.normal(ks[1], (L, H, H), jnp.float32)
    bc = jnp.zeros((L, H), jnp.float32)                  # GCNConv bias (torch init: zeros)
    bng = 1.0 + 0.1 * jax.random.normal(ks[2], (L, H), jnp.float32)   # BN gamma
    bnb = 0.1 * jax.random.normal(ks[3], (L, H), jnp.float32)         # BN beta
    bnm = 0.05 * jax.random.normal(ks[4], (L, H), jnp.float32)        # running mean
    bnv = 1.0 + 0.1 * jax.random.uniform(ks[5], (L, H), jnp.float32)  # running var
    bfg = 1.0 + 0.1 * jax.random.normal(ks[6], (H,), jnp.float32)
    bfb = 0.1 * jax.random.normal(ks[7], (H,), jnp.float32)
    bfm = 0.05 * jax.random.normal(ks[8], (H,), jnp.float32)
    bfv = 1.0 + 0.1 * jax.random.uniform(ks[9], (H,), jnp.float32)
    l1w = (1.0 / jnp.sqrt(H)) * jax.random.normal(ks[10], (H, H), jnp.float32)
    l1b = 0.1 * jax.random.normal(ks[11], (H,), jnp.float32)
    l2w = (1.0 / jnp.sqrt(H)) * jax.random.normal(ks[12], (H, 1), jnp.float32)
    l2b = jnp.zeros((), jnp.float32)

    params = (wc, bc, bng, bnb, bnm, bnv, bfg, bfb, bfm, bfv, l1w, l1b, l2w, l2b)

    # ---- fold BN + pack params (host-side, eval mode only) ----
    # TODO(synk): training-mode BatchNorm (batch statistics) has no folded
    # equivalent; this kernel implements eval-mode semantics only.
    wstack, bstack = fold_params(params)

    # ---- run Pallas kernel ----
    out = gcn_graph_regression(node_feat, a_norm, pool, emb_table, wstack, bstack)
    out = jax.block_until_ready(out)

    ref = reference(node_feat, emb_table, a_norm, pool, params)
    assert out.shape == (B, G, 1)
    # Tolerance loosened vs. the f32 reference because the kernel runs the
    # matmuls with bf16 operands (f32 accumulation), per the perf review.
    assert jnp.allclose(out, ref, rtol=3e-2, atol=3e-2), (out, ref)

    print("KERNEL_OK")
</pallas_src>

<mosaic_0001>
module attributes {stable_mosaic.version = 11 : i64} {
  func.func @gcn_kernel(%arg0: i32, %arg1: memref<1x64x32xbf16, #tpu.memory_space<vmem>>, %arg2: memref<1x64x64xbf16, #tpu.memory_space<vmem>>, %arg3: memref<1x8x64xbf16, #tpu.memory_space<vmem>>, %arg4: memref<4x32x32xbf16, #tpu.memory_space<vmem>>, %arg5: memref<6x32xf32, #tpu.memory_space<vmem>>, %arg6: memref<1x8x1xf32, #tpu.memory_space<vmem>>) attributes {dimension_semantics = [#tpu.dimension_semantics<parallel>], iteration_bounds = array<i64: 1>, scalar_prefetch = 0 : i64, scratch_operands = 0 : i64, tpu.core_type = #tpu.core_type<tc>, window_params = [{transform_indices = @transform_0, window_bounds = array<i64: 1, 64, 32>}, {transform_indices = @transform_1, window_bounds = array<i64: 1, 64, 64>}, {transform_indices = @transform_2, window_bounds = array<i64: 1, 8, 64>}, {pipeline_mode = #tpu.pipeline_mode<synchronous>, transform_indices = @transform_3, window_bounds = array<i64: 4, 32, 32>}, {pipeline_mode = #tpu.pipeline_mode<synchronous>, transform_indices = @transform_4, window_bounds = array<i64: 6, 32>}, {transform_indices = @transform_5, window_bounds = array<i64: 1, 8, 1>}]} {
    %c0 = arith.constant 0 : index
    %c0_0 = arith.constant 0 : index
    %c0_1 = arith.constant 0 : index
    %0 = vector.load %arg1[%c0, %c0_0, %c0_1] : memref<1x64x32xbf16, #tpu.memory_space<vmem>>, vector<1x64x32xbf16>
    %1 = vector.shape_cast %0 : vector<1x64x32xbf16> to vector<64x32xbf16>
    %c0_2 = arith.constant 0 : index
    %c0_3 = arith.constant 0 : index
    %c0_4 = arith.constant 0 : index
    %2 = vector.load %arg2[%c0_2, %c0_3, %c0_4] : memref<1x64x64xbf16, #tpu.memory_space<vmem>>, vector<1x64x64xbf16>
    %3 = vector.shape_cast %2 : vector<1x64x64xbf16> to vector<64x64xbf16>
    %cst = arith.constant dense<0.000000e+00> : vector<64x32xf32>
    %4 = tpu.matmul %3, %1, %cst {dimension_numbers = #tpu.dot_dimension_numbers<[1], [0], [0], [1], [0, 0, 1, 1], [], []>} : vector<64x64xbf16>, vector<64x32xbf16>, vector<64x32xf32> -> vector<64x32xf32>
    %5 = arith.truncf %4 : vector<64x32xf32> to vector<64x32xbf16>
    %c0_5 = arith.constant 0 : index
    %c0_6 = arith.constant 0 : index
    %c0_7 = arith.constant 0 : index
    %6 = vector.load %arg4[%c0_5, %c0_6, %c0_7] : memref<4x32x32xbf16, #tpu.memory_space<vmem>>, vector<1x32x32xbf16>
    %7 = vector.shape_cast %6 : vector<1x32x32xbf16> to vector<32x32xbf16>
    %cst_8 = arith.constant dense<0.000000e+00> : vector<64x32xf32>
    %8 = tpu.matmul %5, %7, %cst_8 {dimension_numbers = #tpu.dot_dimension_numbers<[1], [0], [0], [1], [0, 0, 1, 1], [], []>} : vector<64x32xbf16>, vector<32x32xbf16>, vector<64x32xf32> -> vector<64x32xf32>
    %c0_9 = arith.constant 0 : index
    %c0_10 = arith.constant 0 : index
    %9 = vector.load %arg5[%c0_9, %c0_10] : memref<6x32xf32, #tpu.memory_space<vmem>>, vector<1x32xf32>
    %10 = vector.broadcast %9 : vector<1x32xf32> to vector<64x32xf32>
    %11 = arith.addf %8, %10 : vector<64x32xf32>
    %cst_11 = arith.constant 0.000000e+00 : f32
    %12 = vector.broadcast %cst_11 : f32 to vector<64x32xf32>
    %13 = arith.maximumf %11, %12 : vector<64x32xf32>
    %14 = arith.truncf %13 : vector<64x32xf32> to vector<64x32xbf16>
    %cst_12 = arith.constant dense<0.000000e+00> : vector<64x32xf32>
    %15 = tpu.matmul %3, %14, %cst_12 {dimension_numbers = #tpu.dot_dimension_numbers<[1], [0], [0], [1], [0, 0, 1, 1], [], []>} : vector<64x64xbf16>, vector<64x32xbf16>, vector<64x32xf32> -> vector<64x32xf32>
    %16 = arith.truncf %15 : vector<64x32xf32> to vector<64x32xbf16>
    %c1 = arith.constant 1 : index
    %c0_13 = arith.constant 0 : index
    %c0_14 = arith.constant 0 : index
    %17 = vector.load %arg4[%c1, %c0_13, %c0_14] : memref<4x32x32xbf16, #tpu.memory_space<vmem>>, vector<1x32x32xbf16>
    %18 = vector.shape_cast %17 : vector<1x32x32xbf16> to vector<32x32xbf16>
    %cst_15 = arith.constant dense<0.000000e+00> : vector<64x32xf32>
    %19 = tpu.matmul %16, %18, %cst_15 {dimension_numbers = #tpu.dot_dimension_numbers<[1], [0], [0], [1], [0, 0, 1, 1], [], []>} : vector<64x32xbf16>, vector<32x32xbf16>, vector<64x32xf32> -> vector<64x32xf32>
    %c1_16 = arith.constant 1 : index
    %c0_17 = arith.constant 0 : index
    %20 = vector.load %arg5[%c1_16, %c0_17] : memref<6x32xf32, #tpu.memory_space<vmem>>, vector<1x32xf32>
    %21 = vector.broadcast %20 : vector<1x32xf32> to vector<64x32xf32>
    %22 = arith.addf %19, %21 : vector<64x32xf32>
    %cst_18 = arith.constant 0.000000e+00 : f32
    %23 = vector.broadcast %cst_18 : f32 to vector<64x32xf32>
    %24 = arith.maximumf %22, %23 : vector<64x32xf32>
    %25 = arith.truncf %24 : vector<64x32xf32> to vector<64x32xbf16>
    %cst_19 = arith.constant dense<0.000000e+00> : vector<64x32xf32>
    %26 = tpu.matmul %3, %25, %cst_19 {dimension_numbers = #tpu.dot_dimension_numbers<[1], [0], [0], [1], [0, 0, 1, 1], [], []>} : vector<64x64xbf16>, vector<64x32xbf16>, vector<64x32xf32> -> vector<64x32xf32>
    %27 = arith.truncf %26 : vector<64x32xf32> to vector<64x32xbf16>
    %c2 = arith.constant 2 : index
    %c0_20 = arith.constant 0 : index
    %c0_21 = arith.constant 0 : index
    %28 = vector.load %arg4[%c2, %c0_20, %c0_21] : memref<4x32x32xbf16, #tpu.memory_space<vmem>>, vector<1x32x32xbf16>
    %29 = vector.shape_cast %28 : vector<1x32x32xbf16> to vector<32x32xbf16>
    %cst_22 = arith.constant dense<0.000000e+00> : vector<64x32xf32>
    %30 = tpu.matmul %27, %29, %cst_22 {dimension_numbers = #tpu.dot_dimension_numbers<[1], [0], [0], [1], [0, 0, 1, 1], [], []>} : vector<64x32xbf16>, vector<32x32xbf16>, vector<64x32xf32> -> vector<64x32xf32>
    %c2_23 = arith.constant 2 : index
    %c0_24 = arith.constant 0 : index
    %31 = vector.load %arg5[%c2_23, %c0_24] : memref<6x32xf32, #tpu.memory_space<vmem>>, vector<1x32xf32>
    %32 = vector.broadcast %31 : vector<1x32xf32> to vector<64x32xf32>
    %33 = arith.addf %30, %32 : vector<64x32xf32>
    %cst_25 = arith.constant 0.000000e+00 : f32
    %34 = vector.broadcast %cst_25 : f32 to vector<64x32xf32>
    %35 = arith.maximumf %33, %34 : vector<64x32xf32>
    %36 = arith.truncf %35 : vector<64x32xf32> to vector<64x32xbf16>
    %c0_26 = arith.constant 0 : index
    %c0_27 = arith.constant 0 : index
    %c0_28 = arith.constant 0 : index
    %37 = vector.load %arg3[%c0_26, %c0_27, %c0_28] : memref<1x8x64xbf16, #tpu.memory_space<vmem>>, vector<1x8x64xbf16>
    %38 = vector.shape_cast %37 : vector<1x8x64xbf16> to vector<8x64xbf16>
    %cst_29 = arith.constant dense<0.000000e+00> : vector<8x32xf32>
    %39 = tpu.matmul %38, %36, %cst_29 {dimension_numbers = #tpu.dot_dimension_numbers<[1], [0], [0], [1], [0, 0, 1, 1], [], []>} : vector<8x64xbf16>, vector<64x32xbf16>, vector<8x32xf32> -> vector<8x32xf32>
    %40 = arith.truncf %39 : vector<8x32xf32> to vector<8x32xbf16>
    %c3 = arith.constant 3 : index
    %c0_30 = arith.constant 0 : index
    %c0_31 = arith.constant 0 : index
    %41 = vector.load %arg4[%c3, %c0_30, %c0_31] : memref<4x32x32xbf16, #tpu.memory_space<vmem>>, vector<1x32x32xbf16>
    %42 = vector.shape_cast %41 : vector<1x32x32xbf16> to vector<32x32xbf16>
    %cst_32 = arith.constant dense<0.000000e+00> : vector<8x32xf32>
    %43 = tpu.matmul %40, %42, %cst_32 {dimension_numbers = #tpu.dot_dimension_numbers<[1], [0], [0], [1], [0, 0, 1, 1], [], []>} : vector<8x32xbf16>, vector<32x32xbf16>, vector<8x32xf32> -> vector<8x32xf32>
    %c3_33 = arith.constant 3 : index
    %c0_34 = arith.constant 0 : index
    %44 = vector.load %arg5[%c3_33, %c0_34] : memref<6x32xf32, #tpu.memory_space<vmem>>, vector<1x32xf32>
    %45 = vector.broadcast %44 : vector<1x32xf32> to vector<8x32xf32>
    %46 = arith.addf %43, %45 : vector<8x32xf32>
    %cst_35 = arith.constant 0.000000e+00 : f32
    %47 = vector.broadcast %cst_35 : f32 to vector<8x32xf32>
    %48 = arith.maximumf %46, %47 : vector<8x32xf32>
    %c4 = arith.constant 4 : index
    %c0_36 = arith.constant 0 : index
    %49 = vector.load %arg5[%c4, %c0_36] : memref<6x32xf32, #tpu.memory_space<vmem>>, vector<1x32xf32>
    %c5 = arith.constant 5 : index
    %c0_37 = arith.constant 0 : index
    %50 = vector.load %arg5[%c5, %c0_37] : memref<6x32xf32, #tpu.memory_space<vmem>>, vector<1x1xf32>
    %51 = vector.broadcast %49 : vector<1x32xf32> to vector<8x32xf32>
    %52 = arith.mulf %48, %51 : vector<8x32xf32>
    %cst_38 = arith.constant dense<0.000000e+00> : vector<8xf32>
    %53 = vector.multi_reduction <add>, %52, %cst_38 [1] : vector<8x32xf32> to vector<8xf32>
    %54 = vector.shape_cast %53 : vector<8xf32> to vector<8x1xf32>
    %55 = vector.broadcast %50 : vector<1x1xf32> to vector<8x1xf32>
    %56 = arith.addf %54, %55 : vector<8x1xf32>
    %c0_39 = arith.constant 0 : index
    %c0_40 = arith.constant 0 : index
    %c0_41 = arith.constant 0 : index
    %57 = vector.load %arg6[%c0_39, %c0_40, %c0_41] : memref<1x8x1xf32, #tpu.memory_space<vmem>>, vector<1x8x1xf32>
    %58 = vector.shape_cast %57 : vector<1x8x1xf32> to vector<8x1xf32>
    %59 = vector.shape_cast %56 : vector<8x1xf32> to vector<1x8x1xf32>
    tpu.vector_store %arg6[%c0_39, %c0_40, %c0_41], %59 {strides = array<i32>} : memref<1x8x1xf32, #tpu.memory_space<vmem>>, vector<1x8x1xf32>,
    return
  }
  func.func @transform_0(%arg0: i32) -> (i32, i32, i32) {
    %c0_i32 = arith.constant 0 : i32
    %c0_i32_0 = arith.constant 0 : i32
    %c0_i32_1 = arith.constant 0 : i32
    return %arg0, %c0_i32, %c0_i32_0 : i32, i32, i32
  }
  func.func @transform_1(%arg0: i32) -> (i32, i32, i32) {
    %c0_i32 = arith.constant 0 : i32
    %c0_i32_0 = arith.constant 0 : i32
    %c0_i32_1 = arith.constant 0 : i32
    return %arg0, %c0_i32, %c0_i32_0 : i32, i32, i32
  }
  func.func @transform_2(%arg0: i32) -> (i32, i32, i32) {
    %c0_i32 = arith.constant 0 : i32
    %c0_i32_0 = arith.constant 0 : i32
    %c0_i32_1 = arith.constant 0 : i32
    return %arg0, %c0_i32, %c0_i32_0 : i32, i32, i32
  }
  func.func @transform_3(%arg0: i32) -> (i32, i32, i32) {
    %c0_i32 = arith.constant 0 : i32
    %c0_i32_0 = arith.constant 0 : i32
    %c0_i32_1 = arith.constant 0 : i32
    %c0_i32_2 = arith.constant 0 : i32
    return %c0_i32, %c0_i32_0, %c0_i32_1 : i32, i32, i32
  }
  func.func @transform_4(%arg0: i32) -> (i32, i32) {
    %c0_i32 = arith.constant 0 : i32
    %c0_i32_0 = arith.constant 0 : i32
    %c0_i32_1 = arith.constant 0 : i32
    return %c0_i32, %c0_i32_0 : i32, i32
  }
  func.func @transform_5(%arg0: i32) -> (i32, i32, i32) {
    %c0_i32 = arith.constant 0 : i32
    %c0_i32_0 = arith.constant 0 : i32
    %c0_i32_1 = arith.constant 0 : i32
    return %arg0, %c0_i32, %c0_i32_0 : i32, i32, i32
  }
}

</mosaic_0001>

<bundles_post_ra>
// kernel: tpu_custom_call.1
= control target key start
LH: loop header
LB: loop body
LE: loop exit
PB: predicated region body
PF: predicated region fallthrough
CT: control target
= control target key end

     0   :  { %10 = vsyncpa [#allocation3], 0  ;;  %s1028_s18 = smov [#allocation2]   ;;  %s1170_s0 = inlined_call_operand.vmem [shape: bf16[1,64,32], index: 0, kind: input, shape index: {}]   ;;  %s1171_s1 = inlined_call_operand.vmem [shape: bf16[1,64,64], index: 1, kind: input, shape index: {}]   ;;  %s1172_s2 = inlined_call_operand.vmem [shape: bf16[1,8,64], index: 2, kind: input, shape index: {}]   ;;  %s1173_s3 = inlined_call_operand.hbm [shape: bf16[4,32,32], index: 3, kind: input, shape index: {}]   ;;  %s1174_s4 = inlined_call_operand.vmem [shape: f32[6,32], index: 4, kind: input, shape index: {}]   ;;  %s1175_s5 = inlined_call_operand.vmem [shape: f32[1,8,1], index: 5, kind: output, shape index: {}]  }
   0x1   :  { %s22_s19 = sshll.u32 %s1028_s18, 4  ;;  %s1004_s22 = scalar_lea.hbm %s1173_s3, 1024  ;;  %s23_s19 = int_to_ptr.vmem [resolvable:$true] %s22_s19 }
   0x2   :  { %p1005_p0 = scmp.ne.s32.totalorder %s1173_s3, %s1004_s22  ;;  %p1008_p1 = scmp.lt.u32.totalorder %s1004_s22, %s1173_s3 }
   0x4   :  { %p1010_p2 = pnand %p1008_p1, %p1005_p0 }
   0x6   :  { %1013 = shalt.err (!%p1010_p2)
}
   0x7   :  { %s1014_s27 = scalar_lea.vmem %s23_s19, 1024  ;;  %p1019_p4 = scmp.lt.s32.totalorder %s23_s19, %s23_s19 }
   0x8   :  { %p1015_p3 = scmp.ne.s32.totalorder %s23_s19, %s1014_s27  ;;  %p1020_p5 = scmp.lt.s32.totalorder %s1014_s27, %s1014_s27 }
   0xa   :  { %p1021_p6 = por %p1020_p5, %p1019_p4 }
   0xc   :  { %p1022_p7 = pnand %p1021_p6, %p1015_p3 }
   0xe   :  { %1025 = shalt.err (!%p1022_p7)
}
   0xf   :  { %s1029_s28 = smov 64   ;;  %s1030_s29 = smov 4  }
  0x10   :  { %28 = dma.hbm_to_vmem [thread:$0]  %s1173_s3, 1024, %s23_s19, [#allocation3], %s1029_s28, %s1029_s28, %s1030_s29  }
  0x11   :  { %1026 = dma.done.wait [#allocation3], 1024  }
  0x12   :  { %1027 = vsyncadd [#allocation3], 4294966272  ;;  %v988_v0 = vld [vmem:[%s1170_s0] sm:$0xff]   ;;  %v989_v1 = vld [vmem:[%s1170_s0 + $0x8] sm:$0xff]   ;;  %vm95_vm0 = vcmask 523264   ;;  %vm198_vm1 = vcmask 261120  }
  0x13   :  { %879 = vmatprep.subr.bf16.mxu0 %v988_v0  ;;  %v990_v2 = vld [vmem:[%s1170_s0 + $0x10] sm:$0xff]   ;;  %v1087_v3 = vld [vmem:[%s1171_s1] sm:$0xff]   ;;  %v991_v4 = vld [vmem:[%s1170_s0 + $0x18] sm:$0xff]   ;;  %vm1032_vm2 = vmmov 0   ;;  %vm774_vm3 = vcmask 7168  }
  0x14   :  { %880 = vmatpush3.bf16.msra.mxu0 %v988_v0  ;;  %887 = vmatprep.mubr.msk.bf16.mxu0 %vm95_vm0, %v1087_v3  ;;  %v996_v5 = vld [vmem:[#allocation2] sm:$0xff]   ;;  %v1097_v6 = vld [vmem:[%s1171_s1 + $0x8] sm:$0xff]   ;;  %v1102_v7 = vld [vmem:[%s1171_s1 + $0x10] sm:$0xff]  }
  0x15   :  { %881 = vmatprep.subr.bf16.mxu0 %v989_v1  ;;  %895 = vmatprep.subr.bf16.mxu1 %v996_v5  ;;  %v1111_v8 = vld [vmem:[%s1171_s1 + $0x18] sm:$0xff]   ;;  %v997_v9 = vld [vmem:[#allocation2 + $0x8] sm:$0xff]   ;;  %v998_v22 = vld [vmem:[#allocation2 + $0x10] sm:$0xff]  }
  0x16   :  { %896 = vmatpush3.bf16.msra.mxu1 %v996_v5  ;;  %v999_v23 = vld [vmem:[#allocation2 + $0x18] sm:$0xff]   ;;  %v793_v24 = vld [vmem:[%s1174_s4] ss:$0 sm:$0xff] }
  0x17   :  { %897 = vmatprep.subr.bf16.mxu1 %v997_v9 }
  0x18   :  { %882 = vmatpush3.bf16.msra.mxu0 %v989_v1  ;;  %v1000_v1 = vld [vmem:[#allocation2 + $0x20] sm:$0xff]  }
  0x19   :  { %883 = vmatprep.subr.bf16.mxu0 %v990_v2 }
  0x1a   :  { %898 = vmatpush3.bf16.msra.mxu1 %v997_v9 }
  0x1c   :  { %884 = vmatpush3.bf16.msra.mxu0 %v990_v2  ;;  %v1001_v2 = vld [vmem:[#allocation2 + $0x28] sm:$0xff]  }
  0x1d   :  { %885 = vmatprep.subr.bf16.mxu0 %v991_v4 }
  0x20   :  { %886 = vmatpush3.bf16.msra.mxu0 %v991_v4 }
  0x21   :  { %923 = vmatprep.subr.bf16.mxu0 %v998_v22 }
  0x23   :  { %888 = vmatmul.mubr.msk.bf16.vlgmr.msra.gmra.mrb[0].mxu0 %vm95_vm0, %v1097_v6 }
  0x24   :  { %891 = vmatprep.mubr.msk.bf16.mxu0 %vm95_vm0, %v1102_v7  ;;  %924 = vmatpush3.bf16.msra.mxu0 %v998_v22 }
  0x25   :  { %925 = vmatprep.subr.bf16.mxu0 %v999_v23 }
  0x28   :  { %926 = vmatpush3.bf16.msra.mxu0 %v999_v23 }
  0x29   :  { %951 = vmatprep.subr.bf16.mxu0 %v1000_v1 }
  0x2b   :  { %892 = vmatmul.mubr.msk.bf16.gmra.mrb[4].mxu0 %vm95_vm0, %v1111_v8 }
  0xf6   :  { %v889_v10 = vpop.f32.mrb[0].mxu0 }
  0xf7   :  { %v142_v11 = vpop.f32.mrb[1].mxu0 }
  0xf8   :  { %v890_v12 = vpop.f32.mrb[2].mxu0 }
  0xf9   :  { %v174_v13 = vpack.c.bf16 %v890_v12, %v889_v10  ;;  %v145_v14 = vpop.f32.mrb[3].mxu0 }
  0xfa   :  { %v173_v15 = vpack.c.bf16 %v145_v14, %v142_v11 }
  0xfc   :  { %899 = vmatprep.mubr.msk.bf16.mxu1 %vm198_vm1, %v173_v15 }
  0xfd   :  { %900 = vmatmul.mubr.msk.bf16.vlgmr.msra.gmra.mrb[0].mxu1 %vm198_vm1, %v174_v13 }
  0xfe   :  { %v893_v16 = vpop.f32.mrb[4].mxu0 }
  0xff   :  { %v158_v17 = vpop.f32.mrb[5].mxu0 }
 0x100   :  { %v894_v18 = vpop.f32.mrb[6].mxu0 }
 0x101   :  { %v176_v19 = vpack.c.bf16 %v894_v18, %v893_v16  ;;  %v161_v20 = vpop.f32.mrb[7].mxu0 }
 0x102   :  { %v175_v21 = vpack.c.bf16 %v161_v20, %v158_v17 }
 0x104   :  { %903 = vmatprep.mubr.msk.bf16.mxu1 %vm198_vm1, %v175_v21 }
 0x105   :  { %904 = vmatmul.mubr.msk.bf16.gmra.mrb[4].mxu1 %vm198_vm1, %v176_v19 }
 0x106   :  { %915 = vmatprep.mubr.msk.bf16.mxu1 %vm95_vm0, %v1087_v3 }
 0x1d0   :  { %v901_v25 = vpop.f32.mrb[0].mxu1 }
 0x1d1   :  { %v254_v26 = vadd.f32 %v901_v25, %v793_v24  ;;  %v245_v27 = vpop.f32.mrb[1].mxu1 }
 0x1d2   :  { %v246_v28 = vadd.f32 %v793_v24, %v245_v27  ;;  %v902_v29 = vpop.f32.mrb[2].mxu1 }
 0x1d3   :  { %v257_v30 = vadd.f32 %v902_v29, %v793_v24  ;;  %v248_v31 = vpop.f32.mrb[3].mxu1  ;;  %v278_v33 = vmax.f32 %v254_v26, 0.0 }
 0x1d4   :  { %v249_v32 = vadd.f32 %v793_v24, %v248_v31  ;;  %v276_v35 = vmax.f32 %v246_v28, 0.0 }
 0x1d5   :  { %v279_v34 = vmax.f32 %v257_v30, 0.0 }
 0x1d6   :  { %v277_v36 = vmax.f32 %v249_v32, 0.0 }
 0x1d7   :  { %v285_v37 = vpack.c.bf16 %v279_v34, %v278_v33 }
 0x1d8   :  { %v284_v38 = vpack.c.bf16 %v277_v36, %v276_v35  ;;  %v905_v39 = vpop.f32.mrb[4].mxu1 }
 0x1d9   :  { %v270_v40 = vadd.f32 %v905_v39, %v793_v24  ;;  %v261_v41 = vpop.f32.mrb[5].mxu1 }
 0x1da   :  { %v262_v42 = vadd.f32 %v793_v24, %v261_v41  ;;  %v906_v43 = vpop.f32.mrb[6].mxu1  ;;  %907 = vmatprep.subr.bf16.mxu1 %v284_v38 }
 0x1db   :  { %v273_v44 = vadd.f32 %v906_v43, %v793_v24  ;;  %v264_v45 = vpop.f32.mrb[7].mxu1  ;;  %908 = vmatpush3.bf16.msra.mxu1 %v284_v38  ;;  %v282_v47 = vmax.f32 %v270_v40, 0.0 }
 0x1dc   :  { %v265_v46 = vadd.f32 %v793_v24, %v264_v45  ;;  %909 = vmatprep.subr.bf16.mxu1 %v285_v37  ;;  %v280_v49 = vmax.f32 %v262_v42, 0.0 }
 0x1dd   :  { %v283_v48 = vmax.f32 %v273_v44, 0.0 }
 0x1de   :  { %v281_v50 = vmax.f32 %v265_v46, 0.0  ;;  %v1003_v46 = vld [vmem:[#allocation2 + $0x38] sm:$0xff]  }
 0x1df   :  { %v287_v51 = vpack.c.bf16 %v283_v48, %v282_v47  ;;  %910 = vmatpush3.bf16.msra.mxu1 %v285_v37  ;;  %v815_v47 = vld [vmem:[%s1174_s4 + $0x2] ss:$0 sm:$0xff] }
 0x1e0   :  { %v286_v52 = vpack.c.bf16 %v281_v50, %v280_v49 }
 0x1e2   :  { %911 = vmatprep.subr.bf16.mxu1 %v286_v52 }
 0x1e3   :  { %912 = vmatpush3.bf16.msra.mxu1 %v286_v52 }
 0x1e4   :  { %913 = vmatprep.subr.bf16.mxu1 %v287_v51 }
 0x1e7   :  { %914 = vmatpush3.bf16.msra.mxu1 %v287_v51 }
 0x1ea   :  { %916 = vmatmul.mubr.msk.bf16.vlgmr.msra.gmra.mrb[8].mxu1 %vm95_vm0, %v1097_v6 }
 0x1eb   :  { %919 = vmatprep.mubr.msk.bf16.mxu1 %vm95_vm0, %v1102_v7 }
 0x1f2   :  { %920 = vmatmul.mubr.msk.bf16.gmra.mrb[12].mxu1 %vm95_vm0, %v1111_v8 }
 0x1f3   :  { %943 = vmatprep.mubr.msk.bf16.mxu1 %vm95_vm0, %v1087_v3  ;;  %v804_v3 = vld [vmem:[%s1174_s4 + $0x1] ss:$0 sm:$0xff] }
 0x2bd   :  { %v917_v53 = vpop.f32.mrb[8].mxu1 }
 0x2be   :  { %v322_v54 = vpop.f32.mrb[9].mxu1 }
 0x2bf   :  { %v918_v55 = vpop.f32.mrb[10].mxu1 }
 0x2c0   :  { %v354_v56 = vpack.c.bf16 %v918_v55, %v917_v53  ;;  %v325_v57 = vpop.f32.mrb[11].mxu1 }
 0x2c1   :  { %v353_v58 = vpack.c.bf16 %v325_v57, %v322_v54 }
 0x2c3   :  { %927 = vmatprep.mubr.msk.bf16.mxu0 %vm198_vm1, %v353_v58 }
 0x2c4   :  { %928 = vmatmul.mubr.msk.bf16.vlgmr.msra.gmra.mrb[8].mxu0 %vm198_vm1, %v354_v56 }
 0x2c5   :  { %v921_v59 = vpop.f32.mrb[12].mxu1  ;;  %952 = vmatpush3.bf16.msra.mxu0 %v1000_v1 }
 0x2c6   :  { %v338_v60 = vpop.f32.mrb[13].mxu1  ;;  %953 = vmatprep.subr.bf16.mxu0 %v1001_v2 }
 0x2c7   :  { %v922_v61 = vpop.f32.mrb[14].mxu1 }
 0x2c8   :  { %v356_v62 = vpack.c.bf16 %v922_v61, %v921_v59  ;;  %v341_v63 = vpop.f32.mrb[15].mxu1 }
 0x2c9   :  { %v355_v0 = vpack.c.bf16 %v341_v63, %v338_v60  ;;  %954 = vmatpush3.bf16.msra.mxu0 %v1001_v2 }
 0x2cb   :  { %931 = vmatprep.mubr.msk.bf16.mxu0 %vm198_vm1, %v355_v0 }
 0x2cc   :  { %932 = vmatmul.mubr.msk.bf16.gmra.mrb[12].mxu0 %vm198_vm1, %v356_v62 }
 0x397   :  { %v929_v4 = vpop.f32.mrb[8].mxu0 }
 0x398   :  { %v434_v5 = vadd.f32 %v929_v4, %v804_v3  ;;  %v425_v9 = vpop.f32.mrb[9].mxu0 }
 0x399   :  { %v426_v10 = vadd.f32 %v804_v3, %v425_v9  ;;  %v930_v11 = vpop.f32.mrb[10].mxu0 }
 0x39a   :  { %v437_v12 = vadd.f32 %v930_v11, %v804_v3  ;;  %v428_v13 = vpop.f32.mrb[11].mxu0  ;;  %v458_v15 = vmax.f32 %v434_v5, 0.0 }
 0x39b   :  { %v429_v14 = vadd.f32 %v804_v3, %v428_v13  ;;  %v456_v17 = vmax.f32 %v426_v10, 0.0 }
 0x39c   :  { %v459_v16 = vmax.f32 %v437_v12, 0.0 }
 0x39d   :  { %v457_v18 = vmax.f32 %v429_v14, 0.0 }
 0x39e   :  { %v465_v19 = vpack.c.bf16 %v459_v16, %v458_v15  ;;  %v648_v15 = vld [vmem:[%s1172_s2] sm:$0xf] }
 0x39f   :  { %v464_v20 = vpack.c.bf16 %v457_v18, %v456_v17  ;;  %v933_v21 = vpop.f32.mrb[12].mxu0 }
 0x3a0   :  { %v450_v22 = vadd.f32 %v933_v21, %v804_v3  ;;  %v441_v23 = vpop.f32.mrb[13].mxu0  ;;  %v823_v21 = vld [vmem:[%s1174_s4 + $0x3] ss:$0 sm:$0xff] }
 0x3a1   :  { %v442_v24 = vadd.f32 %v804_v3, %v441_v23  ;;  %v934_v25 = vpop.f32.mrb[14].mxu0  ;;  %935 = vmatprep.subr.bf16.mxu1 %v464_v20 }
 0x3a2   :  { %v453_v26 = vadd.f32 %v934_v25, %v804_v3  ;;  %v444_v27 = vpop.f32.mrb[15].mxu0  ;;  %936 = vmatpush3.bf16.msra.mxu1 %v464_v20  ;;  %v462_v29 = vmax.f32 %v450_v22, 0.0 }
 0x3a3   :  { %v445_v28 = vadd.f32 %v804_v3, %v444_v27  ;;  %937 = vmatprep.subr.bf16.mxu1 %v465_v19  ;;  %v460_v31 = vmax.f32 %v442_v24, 0.0 }
 0x3a4   :  { %v463_v30 = vmax.f32 %v453_v26, 0.0  ;;  %v827_v26 = vld [vmem:[%s1174_s4 + $0x4] ss:$0 sm:$0xff] }
 0x3a5   :  { %v461_v32 = vmax.f32 %v445_v28, 0.0 }
 0x3a6   :  { %v467_v33 = vpack.c.bf16 %v463_v30, %v462_v29  ;;  %938 = vmatpush3.bf16.msra.mxu1 %v465_v19 }
 0x3a7   :  { %v466_v34 = vpack.c.bf16 %v461_v32, %v460_v31  ;;  %v828_v31 = vld [vmem:[%s1174_s4 + $0x5] ss:$0 sm:$0xff] }
 0x3a9   :  { %939 = vmatprep.subr.bf16.mxu1 %v466_v34 }
 0x3aa   :  { %940 = vmatpush3.bf16.msra.mxu1 %v466_v34 }
 0x3ab   :  { %941 = vmatprep.subr.bf16.mxu1 %v467_v33 }
 0x3ae   :  { %942 = vmatpush3.bf16.msra.mxu1 %v467_v33 }
 0x3b1   :  { %944 = vmatmul.mubr.msk.bf16.vlgmr.msra.gmra.mrb[16].mxu1 %vm95_vm0, %v1097_v6 }
 0x3b2   :  { %947 = vmatprep.mubr.msk.bf16.mxu1 %vm95_vm0, %v1102_v7  ;;  %v1031_v7 = vmov 0.0  }
 0x3b3   :  { %963 = vmatprep.subr.bf16.mxu1 %v1031_v7  ;;  %975 = vmatprep.subr.bf16.mxu0 %v1031_v7 }
 0x3b9   :  { %948 = vmatmul.mubr.msk.bf16.gmra.mrb[20].mxu1 %vm95_vm0, %v1111_v8  ;;  %v1002_v8 = vld [vmem:[#allocation2 + $0x30] sm:$0xff]  }
 0x3ba   :  { %971 = vmatprep.mubr.msk.bf16.mxu1 %vm1032_vm2, %v1031_v7 }
 0x484   :  { %v945_v35 = vpop.f32.mrb[16].mxu1 }
 0x485   :  { %v502_v36 = vpop.f32.mrb[17].mxu1 }
 0x486   :  { %v946_v37 = vpop.f32.mrb[18].mxu1 }
 0x487   :  { %v534_v38 = vpack.c.bf16 %v946_v37, %v945_v35  ;;  %v505_v39 = vpop.f32.mrb[19].mxu1 }
 0x488   :  { %v533_v40 = vpack.c.bf16 %v505_v39, %v502_v36 }
 0x48a   :  { %955 = vmatprep.mubr.msk.bf16.mxu0 %vm198_vm1, %v533_v40 }
 0x48b   :  { %956 = vmatmul.mubr.msk.bf16.vlgmr.msra.gmra.mrb[16].mxu0 %vm198_vm1, %v534_v38 }
 0x48c   :  { %v949_v41 = vpop.f32.mrb[20].mxu1  ;;  %976 = vmatpush3.bf16.msra.mxu0 %v1002_v8 }
 0x48d   :  { %v518_v42 = vpop.f32.mrb[21].mxu1  ;;  %977 = vmatprep.subr.bf16.mxu0 %v1031_v7 }
 0x48e   :  { %v950_v43 = vpop.f32.mrb[22].mxu1 }
 0x48f   :  { %v536_v6 = vpack.c.bf16 %v950_v43, %v949_v41  ;;  %v521_v44 = vpop.f32.mrb[23].mxu1 }
 0x490   :  { %v535_v45 = vpack.c.bf16 %v521_v44, %v518_v42  ;;  %978 = vmatpush3.bf16.msra.mxu0 %v1003_v46 }
 0x492   :  { %959 = vmatprep.mubr.msk.bf16.mxu0 %vm198_vm1, %v535_v45 }
 0x493   :  { %960 = vmatmul.mubr.msk.bf16.gmra.mrb[20].mxu0 %vm198_vm1, %v536_v6 }
 0x494   :  { %979 = vmatprep.mubr.msk.bf16.mxu0 %vm1032_vm2, %v1031_v7 }
 0x55e   :  { %v957_v48 = vpop.f32.mrb[16].mxu0 }
 0x55f   :  { %v614_v49 = vadd.f32 %v957_v48, %v815_v47  ;;  %v605_v50 = vpop.f32.mrb[17].mxu0 }
 0x560   :  { %v606_v51 = vadd.f32 %v815_v47, %v605_v50  ;;  %v958_v52 = vpop.f32.mrb[18].mxu0 }
 0x561   :  { %v617_v53 = vadd.f32 %v958_v52, %v815_v47  ;;  %v608_v54 = vpop.f32.mrb[19].mxu0  ;;  %v638_v56 = vmax.f32 %v614_v49, 0.0 }
 0x562   :  { %v609_v55 = vadd.f32 %v815_v47, %v608_v54  ;;  %v636_v58 = vmax.f32 %v606_v51, 0.0 }
 0x563   :  { %v639_v57 = vmax.f32 %v617_v53, 0.0 }
 0x564   :  { %v637_v59 = vmax.f32 %v609_v55, 0.0 }
 0x565   :  { %v645_v60 = vpack.c.bf16 %v639_v57, %v638_v56 }
 0x566   :  { %v644_v61 = vpack.c.bf16 %v637_v59, %v636_v58  ;;  %v961_v62 = vpop.f32.mrb[20].mxu0 }
 0x567   :  { %v630_v63 = vadd.f32 %v961_v62, %v815_v47  ;;  %v621_v0 = vpop.f32.mrb[21].mxu0 }
 0x568   :  { %v622_v1 = vadd.f32 %v815_v47, %v621_v0  ;;  %v962_v2 = vpop.f32.mrb[22].mxu0  ;;  %964 = vmatpush3.bf16.msra.mxu1 %v644_v61 }
 0x569   :  { %v633_v3 = vadd.f32 %v962_v2, %v815_v47  ;;  %v624_v4 = vpop.f32.mrb[23].mxu0  ;;  %965 = vmatprep.subr.bf16.mxu1 %v1031_v7  ;;  %v642_v9 = vmax.f32 %v630_v63, 0.0 }
 0x56a   :  { %v625_v5 = vadd.f32 %v815_v47, %v624_v4  ;;  %v640_v11 = vmax.f32 %v622_v1, 0.0 }
 0x56b   :  { %v643_v10 = vmax.f32 %v633_v3, 0.0 }
 0x56c   :  { %v641_v12 = vmax.f32 %v625_v5, 0.0  ;;  %966 = vmatpush3.bf16.msra.mxu1 %v645_v60 }
 0x56d   :  { %v647_v13 = vpack.c.bf16 %v643_v10, %v642_v9  ;;  %967 = vmatprep.subr.bf16.mxu1 %v1031_v7 }
 0x56e   :  { %v646_v14 = vpack.c.bf16 %v641_v12, %v640_v11 }
 0x570   :  { %968 = vmatpush3.bf16.msra.mxu1 %v646_v14 }
 0x571   :  { %969 = vmatprep.subr.bf16.mxu1 %v1031_v7 }
 0x574   :  { %970 = vmatpush3.bf16.msra.mxu1 %v647_v13 }
 0x577   :  { %972 = vmatmul.mubr.msk.bf16.vlgmr.msra.gmra.mrb[24].mxu1 %vm95_vm0, %v648_v15 }
 0x64a   :  { %v686_v16 = vpop.f32.mrb[24].mxu1 }
 0x64b   :  { %v692_v17 = vpack.c.bf16 %v686_v16, %v686_v16  ;;  %v973_v18 = vpop.f32.mrb[25].mxu1 }
 0x64c   :  { %v689_v19 = vpop.f32.mrb[26].mxu1 }
 0x64d   :  { %v974_v20 = vpop.f32.mrb[27].mxu1  ;;  %980 = vmatmul.mubr.msk.bf16.vlgmr.msra.gmra.mrb[24].mxu0 %vm198_vm1, %v692_v17 }
 0x720   :  { %v752_v22 = vpop.f32.mrb[24].mxu0 }
 0x721   :  { %v753_v23 = vadd.f32 %v823_v21, %v752_v22  ;;  %v981_v24 = vpop.f32.mrb[25].mxu0 }
 0x722   :  { %v755_v25 = vpop.f32.mrb[26].mxu0 }
 0x723   :  { %v758_v27 = vmax.f32 %v753_v23, 0.0  ;;  %v982_v28 = vpop.f32.mrb[27].mxu0 }
 0x725   :  { %v765_v29 = vmul.f32 %v827_v26, %v758_v27 }
 0x727   :  { %v766_v30 = vsel %vm198_vm1, %v765_v29, 0.0 }
 0x728   :  { %767 = vadd.xlane.f32.xlu0 %v766_v30 }
 0x7b5   :  { %v768_v32 = vpop.xlane.xlu0 %767 }
 0x7b6   :  { %v773_v33 = vadd.f32 %v828_v31, %v768_v32 }
 0x7b8   :  { %775 = vst.msk [vmem:[%s1175_s5] sm:$0xff] %vm774_vm3, %v773_v33 }
 0x7b9   :  { %780 = vsyncpa [#allocation3], 1 }

</bundles_post_ra>
